<compile_context>
chip_gen: v7x
topology: tpu7x:2x2x1
jax: 0.10.0
libtpu: 0.0.40
codegen_flags: <defaults>
</compile_context>

<pallas_src>
import math

import jax
import jax.numpy as jnp
from jax.experimental import pallas as pl
from jax.experimental.pallas import tpu as pltpu

HIDDEN = 512      # per-head hidden width (PyTorch Linear(obs, 512))
OUT_PAD = 128     # lane-dense padded output width (>= n_actions + 1)


def _a2c_fused_kernel(x_ref, w1_ref, b1_ref, w2_ref, b2_ref, out_ref):
    # Hidden layer for BOTH heads in one MXU pass: h = relu(x @ [Wp1 | Wv1] + [bp1 | bv1]).
    h = jnp.dot(x_ref[...], w1_ref[...], preferred_element_type=jnp.float32) + b1_ref[...]
    h = jnp.maximum(h, 0.0)
    # Block-diagonal, zero-padded second layer -> single lane-dense (TB, 128) store.
    out_ref[...] = (jnp.dot(h, w2_ref[...], preferred_element_type=jnp.float32)
                    + b2_ref[...])


def _round_up(x, m):
    return ((x + m - 1) // m) * m


def pack_params(params, n_actions, hidden=HIDDEN, out_pad=OUT_PAD):
    """Fuse PyTorch-style per-head params into two lane-dense weight blocks.

    w1: (obs, 2*hidden)   = [wp1 | wv1]
    b1: (1,  2*hidden)    = [bp1 | bv1]
    w2: (2*hidden, out_pad) block-diagonal: rows [:hidden]  x cols [:n_actions] <- wp2,
                                            rows [hidden:]  x col  [n_actions]  <- wv2,
                                            everything else zero.
    b2: (1, out_pad) with bp2 in lanes [:n_actions], bv2 in lane [n_actions], rest zero.
    """
    w1 = jnp.concatenate([params["wp1"], params["wv1"]], axis=1)
    b1 = jnp.concatenate([params["bp1"], params["bv1"]], axis=1)

    w2 = jnp.zeros((2 * hidden, out_pad), jnp.float32)
    w2 = w2.at[:hidden, :n_actions].set(params["wp2"])
    w2 = w2.at[hidden:, n_actions:n_actions + 1].set(params["wv2"])

    b2 = jnp.zeros((1, out_pad), jnp.float32)
    b2 = b2.at[:, :n_actions].set(params["bp2"])
    b2 = b2.at[:, n_actions:n_actions + 1].set(params["bv2"])
    return dict(w1=w1, b1=b1, w2=w2, b2=b2)


def linear_a2c_forward(x, packed, n_actions):
    """x: (B, obs_dim) any float dtype. packed: output of pack_params. Returns (logits, value)."""
    fx = x.astype(jnp.float32)          # PyTorch: fx = x.float()
    B, obs = fx.shape
    hidden2 = packed["w1"].shape[1]     # 2 * HIDDEN
    out_pad = packed["w2"].shape[1]     # OUT_PAD

    # Batch tile: multiple of 8; capped so (TB*hidden2 + TB*out_pad + TB*obs) f32,
    # double-buffered, stays far under v7x's 64 MiB VMEM even at large B.
    TB = min(256, _round_up(B, 8))
    B_pad = _round_up(B, TB)
    if B_pad != B:
        fx = jnp.pad(fx, ((0, B_pad - B), (0, 0)))

    flops = 2 * B_pad * (obs * hidden2 + hidden2 * out_pad)
    bytes_accessed = 4 * (B_pad * obs + obs * hidden2 + hidden2
                          + hidden2 * out_pad + out_pad + B_pad * out_pad)

    out = pl.pallas_call(
        _a2c_fused_kernel,
        out_shape=jax.ShapeDtypeStruct((B_pad, out_pad), jnp.float32),
        grid=(B_pad // TB,),
        in_specs=[
            pl.BlockSpec((TB, obs), lambda i: (i, 0)),            # x tile (streams over batch)
            pl.BlockSpec((obs, hidden2), lambda i: (0, 0)),       # fused W1 (resident)
            pl.BlockSpec((1, hidden2), lambda i: (0, 0)),         # fused b1 (resident)
            pl.BlockSpec((hidden2, out_pad), lambda i: (0, 0)),   # fused W2 (resident)
            pl.BlockSpec((1, out_pad), lambda i: (0, 0)),         # fused b2 (resident)
        ],
        out_specs=pl.BlockSpec((TB, out_pad), lambda i: (i, 0)),  # single lane-dense output
        compiler_params=pltpu.CompilerParams(
            dimension_semantics=("parallel",)),
        cost_estimate=pl.CostEstimate(flops=flops, transcendentals=0,
                                      bytes_accessed=bytes_accessed),
    )(fx, packed["w1"], packed["b1"], packed["w2"], packed["b2"])

    policy_logits = out[:B, :n_actions]
    value = out[:B, n_actions:n_actions + 1]
    return policy_logits, value


def init_params(key, obs_dim, n_actions, hidden=HIDDEN):
    """Deterministic init mimicking PyTorch's default Linear init (U(-1/sqrt(fan_in), +))."""
    def linear(key, fan_in, fan_out):
        kw, kb = jax.random.split(key)
        bound = 1.0 / math.sqrt(fan_in)
        w = jax.random.uniform(kw, (fan_in, fan_out), jnp.float32, -bound, bound)
        b = jax.random.uniform(kb, (1, fan_out), jnp.float32, -bound, bound)
        return w, b

    k1, k2, k3, k4 = jax.random.split(key, 4)
    wp1, bp1 = linear(k1, obs_dim, hidden)
    wp2, bp2 = linear(k2, hidden, n_actions)
    wv1, bv1 = linear(k3, obs_dim, hidden)
    wv2, bv2 = linear(k4, hidden, 1)
    return dict(wp1=wp1, bp1=bp1, wp2=wp2, bp2=bp2,
                wv1=wv1, bv1=bv1, wv2=wv2, bv2=bv2)


if __name__ == "__main__":
    key = jax.random.PRNGKey(0)
    k_params, k_x = jax.random.split(key)

    obs_dim = 4       # CartPole observation size (input_shape[0])
    n_actions = 2     # CartPole actions
    batch = 8

    params = init_params(k_params, obs_dim, n_actions)
    packed = jax.tree_util.tree_map(jax.block_until_ready,
                                    pack_params(params, n_actions))
    x = jax.random.normal(k_x, (batch, obs_dim), jnp.float32)

    policy_logits, value = linear_a2c_forward(x, packed, n_actions)
    jax.block_until_ready((policy_logits, value))

    # Reference check in plain JAX against the UNFUSED per-head math.
    relu = lambda t: jnp.maximum(t, 0.0)
    ref_pol = relu(x @ params["wp1"] + params["bp1"]) @ params["wp2"] + params["bp2"]
    ref_val = relu(x @ params["wv1"] + params["bv1"]) @ params["wv2"] + params["bv2"]
    assert policy_logits.shape == (batch, n_actions)
    assert value.shape == (batch, 1)
    assert jnp.allclose(policy_logits, ref_pol, atol=1e-5)
    assert jnp.allclose(value, ref_val, atol=1e-5)

    print("KERNEL_OK")
</pallas_src>

<mosaic_0001>
module attributes {stable_mosaic.version = 11 : i64} {
  func.func @_a2c_fused_kernel(%arg0: i32, %arg1: memref<8x4xf32, #tpu.memory_space<vmem>>, %arg2: memref<4x1024xf32, #tpu.memory_space<vmem>>, %arg3: memref<1x1024xf32, #tpu.memory_space<vmem>>, %arg4: memref<1024x128xf32, #tpu.memory_space<vmem>>, %arg5: memref<1x128xf32, #tpu.memory_space<vmem>>, %arg6: memref<8x128xf32, #tpu.memory_space<vmem>>) attributes {dimension_semantics = [#tpu.dimension_semantics<parallel>], iteration_bounds = array<i64: 1>, scalar_prefetch = 0 : i64, scratch_operands = 0 : i64, tpu.core_type = #tpu.core_type<tc>, window_params = [{transform_indices = @transform_0, window_bounds = array<i64: 8, 4>}, {pipeline_mode = #tpu.pipeline_mode<synchronous>, transform_indices = @transform_1, window_bounds = array<i64: 4, 1024>}, {pipeline_mode = #tpu.pipeline_mode<synchronous>, transform_indices = @transform_2, window_bounds = array<i64: 1, 1024>}, {pipeline_mode = #tpu.pipeline_mode<synchronous>, transform_indices = @transform_3, window_bounds = array<i64: 1024, 128>}, {pipeline_mode = #tpu.pipeline_mode<synchronous>, transform_indices = @transform_4, window_bounds = array<i64: 1, 128>}, {transform_indices = @transform_5, window_bounds = array<i64: 8, 128>}]} {
    %c0 = arith.constant 0 : index
    %c0_0 = arith.constant 0 : index
    %0 = vector.load %arg1[%c0, %c0_0] : memref<8x4xf32, #tpu.memory_space<vmem>>, vector<8x4xf32>
    %c0_1 = arith.constant 0 : index
    %c0_2 = arith.constant 0 : index
    %1 = vector.load %arg2[%c0_1, %c0_2] : memref<4x1024xf32, #tpu.memory_space<vmem>>, vector<4x1024xf32>
    %cst = arith.constant dense<0.000000e+00> : vector<8x1024xf32>
    %2 = tpu.matmul %0, %1, %cst {dimension_numbers = #tpu.dot_dimension_numbers<[1], [0], [0], [1], [0, 0, 1, 1], [], []>} : vector<8x4xf32>, vector<4x1024xf32>, vector<8x1024xf32> -> vector<8x1024xf32>
    %c0_3 = arith.constant 0 : index
    %c0_4 = arith.constant 0 : index
    %3 = vector.load %arg3[%c0_3, %c0_4] : memref<1x1024xf32, #tpu.memory_space<vmem>>, vector<1x1024xf32>
    %4 = vector.broadcast %3 : vector<1x1024xf32> to vector<8x1024xf32>
    %5 = arith.addf %2, %4 : vector<8x1024xf32>
    %cst_5 = arith.constant 0.000000e+00 : f32
    %6 = vector.broadcast %cst_5 : f32 to vector<8x1024xf32>
    %7 = arith.maximumf %5, %6 : vector<8x1024xf32>
    %c0_6 = arith.constant 0 : index
    %c0_7 = arith.constant 0 : index
    %8 = vector.load %arg4[%c0_6, %c0_7] : memref<1024x128xf32, #tpu.memory_space<vmem>>, vector<1024x128xf32>
    %cst_8 = arith.constant dense<0.000000e+00> : vector<8x128xf32>
    %9 = tpu.matmul %7, %8, %cst_8 {dimension_numbers = #tpu.dot_dimension_numbers<[1], [0], [0], [1], [0, 0, 1, 1], [], []>} : vector<8x1024xf32>, vector<1024x128xf32>, vector<8x128xf32> -> vector<8x128xf32>
    %c0_9 = arith.constant 0 : index
    %c0_10 = arith.constant 0 : index
    %10 = vector.load %arg5[%c0_9, %c0_10] : memref<1x128xf32, #tpu.memory_space<vmem>>, vector<1x128xf32>
    %11 = vector.broadcast %10 : vector<1x128xf32> to vector<8x128xf32>
    %12 = arith.addf %9, %11 : vector<8x128xf32>
    %c0_11 = arith.constant 0 : index
    %c0_12 = arith.constant 0 : index
    %13 = vector.load %arg6[%c0_11, %c0_12] : memref<8x128xf32, #tpu.memory_space<vmem>>, vector<8x128xf32>
    tpu.vector_store %arg6[%c0_11, %c0_12], %12 {strides = array<i32>} : memref<8x128xf32, #tpu.memory_space<vmem>>, vector<8x128xf32>,
    return
  }
  func.func @transform_0(%arg0: i32) -> (i32, i32) {
    %c0_i32 = arith.constant 0 : i32
    %c0_i32_0 = arith.constant 0 : i32
    return %arg0, %c0_i32 : i32, i32
  }
  func.func @transform_1(%arg0: i32) -> (i32, i32) {
    %c0_i32 = arith.constant 0 : i32
    %c0_i32_0 = arith.constant 0 : i32
    %c0_i32_1 = arith.constant 0 : i32
    return %c0_i32, %c0_i32_0 : i32, i32
  }
  func.func @transform_2(%arg0: i32) -> (i32, i32) {
    %c0_i32 = arith.constant 0 : i32
    %c0_i32_0 = arith.constant 0 : i32
    %c0_i32_1 = arith.constant 0 : i32
    return %c0_i32, %c0_i32_0 : i32, i32
  }
  func.func @transform_3(%arg0: i32) -> (i32, i32) {
    %c0_i32 = arith.constant 0 : i32
    %c0_i32_0 = arith.constant 0 : i32
    %c0_i32_1 = arith.constant 0 : i32
    return %c0_i32, %c0_i32_0 : i32, i32
  }
  func.func @transform_4(%arg0: i32) -> (i32, i32) {
    %c0_i32 = arith.constant 0 : i32
    %c0_i32_0 = arith.constant 0 : i32
    %c0_i32_1 = arith.constant 0 : i32
    return %c0_i32, %c0_i32_0 : i32, i32
  }
  func.func @transform_5(%arg0: i32) -> (i32, i32) {
    %c0_i32 = arith.constant 0 : i32
    %c0_i32_0 = arith.constant 0 : i32
    return %arg0, %c0_i32 : i32, i32
  }
}

</mosaic_0001>

<bundles_post_ra>
// kernel: tpu_custom_call.1
= control target key start
LH: loop header
LB: loop body
LE: loop exit
PB: predicated region body
PF: predicated region fallthrough
CT: control target
= control target key end

     0   :  { %10 = vsyncpa [#allocation3], 0  ;;  %s1336_s0 = inlined_call_operand.vmem [shape: f32[8,4], index: 0, kind: input, shape index: {}]   ;;  %s1337_s1 = inlined_call_operand.hbm [shape: f32[4,1024], index: 1, kind: input, shape index: {}]   ;;  %s1338_s2 = inlined_call_operand.vmem [shape: f32[1,1024], index: 2, kind: input, shape index: {}]   ;;  %s1339_s3 = inlined_call_operand.hbm [shape: f32[1024,128], index: 3, kind: input, shape index: {}]   ;;  %s1340_s4 = inlined_call_operand.vmem [shape: f32[1,128], index: 4, kind: input, shape index: {}]   ;;  %s1341_s5 = inlined_call_operand.hbm [shape: f32[8,128], index: 5, kind: output, shape index: {}]  }
   0x1   :  { %11 = vsyncpa [#allocation6], 0 }
   0x2   :  { %12 = vsyncpa [#allocation4], 0  ;;  %s1210_s18 = smov [#allocation2]   ;;  %s1211_s20 = smov [#allocation5]  }
   0x3   :  { %s21_s19 = sshll.u32 %s1210_s18, 4  ;;  %s32_s21 = sshll.u32 %s1211_s20, 4  ;;  %s22_s19 = int_to_ptr.vmem [resolvable:$true] %s21_s19  ;;  %s1246_s21 = int_to_ptr.vmem [resolvable:$true] %s32_s21 }
   0x4   :  { %s1138_s24 = scalar_lea.hbm %s1337_s1, 512 }
   0x5   :  { %p1139_p0 = scmp.ne.s32.totalorder %s1337_s1, %s1138_s24  ;;  %p1142_p1 = scmp.lt.u32.totalorder %s1138_s24, %s1337_s1 }
   0x7   :  { %p1144_p2 = pnand %p1142_p1, %p1139_p0 }
   0x9   :  { %1147 = shalt.err (!%p1144_p2)
}
   0xa   :  { %s1148_s29 = scalar_lea.vmem %s22_s19, 512  ;;  %p1153_p4 = scmp.lt.s32.totalorder %s22_s19, %s22_s19 }
   0xb   :  { %p1149_p3 = scmp.ne.s32.totalorder %s22_s19, %s1148_s29  ;;  %p1154_p5 = scmp.lt.s32.totalorder %s1148_s29, %s1148_s29 }
   0xd   :  { %p1155_p6 = por %p1154_p5, %p1153_p4 }
   0xf   :  { %p1156_p7 = pnand %p1155_p6, %p1149_p3 }
  0x11   :  { %1159 = shalt.err (!%p1156_p7)
}
  0x12   :  { %24 = dma.hbm_to_vmem [thread:$0]  %s1337_s1, 512, %s22_s19, [#allocation3]  }
  0x13   :  { %s1160_s9 = scalar_lea.hbm %s1339_s3, 16384 }
  0x14   :  { %p1161_p8 = scmp.ne.s32.totalorder %s1339_s3, %s1160_s9  ;;  %p1164_p9 = scmp.lt.u32.totalorder %s1160_s9, %s1339_s3 }
  0x16   :  { %p1166_p10 = pnand %p1164_p9, %p1161_p8 }
  0x18   :  { %1169 = shalt.err (!%p1166_p10)
}
  0x19   :  { %s1170_s14 = scalar_lea.vmem %s1246_s21, 16384  ;;  %p1175_p12 = scmp.lt.s32.totalorder %s1246_s21, %s1246_s21 }
  0x1a   :  { %p1171_p11 = scmp.ne.s32.totalorder %s1246_s21, %s1170_s14  ;;  %p1176_p13 = scmp.lt.s32.totalorder %s1170_s14, %s1170_s14 }
  0x1c   :  { %p1177_p0 = por %p1176_p13, %p1175_p12 }
  0x1e   :  { %p1178_p1 = pnand %p1177_p0, %p1171_p11 }
  0x20   :  { %1181 = shalt.err (!%p1178_p1)
}
  0x21   :  { %s1212_s1 = smov 128   ;;  %s1213_s15 = smov 8  }
  0x22   :  { %38 = dma.hbm_to_vmem [thread:$0]  %s1339_s3, 16384, %s1246_s21, [#allocation6], %s1212_s1, %s1212_s1, %s1213_s15  }
  0x23   :  { %1204 = dma.done.wait [#allocation3], 512  }
  0x24   :  { %1205 = vsyncadd [#allocation3], 4294966784 }
  0x25   :  { %1206 = dma.done.wait [#allocation6], 16384  }
  0x26   :  { %1207 = vsyncadd [#allocation6], 4294950912  ;;  %v1214_v0 = vmov 0.0   ;;  %v48_v1 = vld [vmem:[#allocation2] sm:$0xff]  ;;  %vm106_vm0 = vcmask 1043456   ;;  %v49_v2 = vld [vmem:[#allocation2 + $0x8] sm:$0xff] }
  0x27   :  { %187 = vmatprep.mubr.f32.mxu0 %v1214_v0  ;;  %258 = vmatprep.mubr.f32.mxu1 %v1214_v0  ;;  %v98_v3 = vcombine.high %v48_v1, %v48_v1  ;;  %v99_v4 = vcombine.high %v49_v2, %v49_v2  ;;  %v47_v5 = vld [vmem:[%s1336_s0] sm:$0xff]  ;;  %v50_v6 = vld [vmem:[#allocation2 + $0x10] sm:$0xff]  ;;  %vm102_vm1 = vcmask 31744   ;;  %v431_v10 = vld [vmem:[#allocation5 + $0x80] sm:$0xff]  ;;  %s1215_s21 = smov [#allocation7]  }
  0x28   :  { %v51_v7 = vld [vmem:[#allocation2 + $0x18] sm:$0xff]  ;;  %v100_v8 = vcombine.high %v50_v6, %v50_v6  ;;  %v432_v11 = vld [vmem:[#allocation5 + $0x88] sm:$0xff]  ;;  %v463_v12 = vld [vmem:[#allocation5 + $0x180] sm:$0xff]  ;;  %s837_s22 = sshll.u32 %s1215_s21, 4  ;;  %s838_s22 = int_to_ptr.vmem [resolvable:$true] %s837_s22 }
  0x29   :  { %v101_v9 = vcombine.high %v51_v7, %v51_v7  ;;  %847 = vmatprep.subr.msk.mxu0 %vm106_vm0, %v98_v3  ;;  %850 = vmatprep.subr.msk.mxu1 %vm106_vm0, %v99_v4  ;;  %v464_v13 = vld [vmem:[#allocation5 + $0x188] sm:$0xff]  ;;  %v415_v14 = vld [vmem:[#allocation5] sm:$0xff]  ;;  %v433_v18 = vld [vmem:[#allocation5 + $0x90] sm:$0xff]  ;;  %v1000_v22 = vpack.c.bf16 %v432_v11, %v431_v10  ;;  %s1182_s23 = scalar_lea.vmem %s838_s22, 128  ;;  %p1187_p3 = scmp.lt.s32.totalorder %s838_s22, %s838_s22 }
  0x2a   :  { %v416_v15 = vld [vmem:[#allocation5 + $0x8] sm:$0xff]  ;;  %848 = vmatpush1.msk.msra.mxu0 %vm106_vm0, %v48_v1  ;;  %851 = vmatpush1.msk.msra.mxu1 %vm106_vm0, %v49_v2  ;;  %v447_v16 = vld [vmem:[#allocation5 + $0x100] sm:$0xff]  ;;  %v434_v19 = vld [vmem:[#allocation5 + $0x98] sm:$0xff]  ;;  %v1032_v23 = vpack.c.bf16 %v464_v13, %v463_v12  ;;  %p1183_p2 = scmp.ne.s32.totalorder %s838_s22, %s1182_s23  ;;  %p1188_p4 = scmp.lt.s32.totalorder %s1182_s23, %s1182_s23 }
  0x2b   :  { %v448_v17 = vld [vmem:[#allocation5 + $0x108] sm:$0xff]  ;;  %849 = vmatmul.mubr.msk.f32.vlgmr.msra.gmra.mrb[0].mxu0 %vm102_vm1, %v47_v5  ;;  %852 = vmatmul.mubr.msk.f32.vlgmr.msra.gmra.mrb[0].mxu1 %vm102_vm1, %v47_v5  ;;  %v465_v20 = vld [vmem:[#allocation5 + $0x190] sm:$0xff]  ;;  %v466_v21 = vld [vmem:[#allocation5 + $0x198] sm:$0xff]  ;;  %v1002_v24 = vpack.c.bf16 %v416_v15, %v415_v14  ;;  %v1004_v28 = vpack.c.bf16 %v434_v19, %v433_v18 }
  0x2c   :  { %853 = vmatprep.subr.msk.mxu0 %vm106_vm0, %v100_v8  ;;  %856 = vmatprep.subr.msk.mxu1 %vm106_vm0, %v101_v9  ;;  %v1034_v25 = vpack.c.bf16 %v448_v17, %v447_v16  ;;  %v417_v26 = vld [vmem:[#allocation5 + $0x10] sm:$0xff]  ;;  %v418_v27 = vld [vmem:[#allocation5 + $0x18] sm:$0xff]  ;;  %v1036_v29 = vpack.c.bf16 %v466_v21, %v465_v20  ;;  %v435_v32 = vld [vmem:[#allocation5 + $0xa0] sm:$0xff]  ;;  %p1189_p5 = por %p1188_p4, %p1187_p3 }
  0x2d   :  { %854 = vmatpush1.msk.msra.mxu0 %vm106_vm0, %v50_v6  ;;  %329 = vmatprep.mubr.f32.mxu0 %v1214_v0  ;;  %v449_v30 = vld [vmem:[#allocation5 + $0x110] sm:$0xff]  ;;  %v450_v31 = vld [vmem:[#allocation5 + $0x118] sm:$0xff]  ;;  %v436_v33 = vld [vmem:[#allocation5 + $0xa8] sm:$0xff]  ;;  %v1006_v36 = vpack.c.bf16 %v418_v27, %v417_v26 }
  0x2e   :  { %857 = vmatpush1.msk.msra.mxu1 %vm106_vm0, %v51_v7  ;;  %400 = vmatprep.mubr.f32.mxu1 %v1214_v0  ;;  %v467_v34 = vld [vmem:[#allocation5 + $0x1a0] sm:$0xff]  ;;  %v468_v35 = vld [vmem:[#allocation5 + $0x1a8] sm:$0xff]  ;;  %v1038_v37 = vpack.c.bf16 %v450_v31, %v449_v30  ;;  %v1008_v40 = vpack.c.bf16 %v436_v33, %v435_v32  ;;  %v437_v44 = vld [vmem:[#allocation5 + $0xb0] sm:$0xff]  ;;  %p1190_p6 = pnand %p1189_p5, %p1183_p2 }
  0x2f   :  { %855 = vmatmul.mubr.msk.f32.vlgmr.msra.gmra.mrb[2].mxu0 %vm102_vm1, %v47_v5  ;;  %858 = vmatmul.mubr.msk.f32.vlgmr.msra.gmra.mrb[2].mxu1 %vm102_vm1, %v47_v5  ;;  %v419_v38 = vld [vmem:[#allocation5 + $0x20] sm:$0xff]  ;;  %v420_v39 = vld [vmem:[#allocation5 + $0x28] sm:$0xff]  ;;  %v1040_v41 = vpack.c.bf16 %v468_v35, %v467_v34  ;;  %v438_v45 = vld [vmem:[#allocation5 + $0xb8] sm:$0xff] }
  0x30   :  { %1001 = vmatprep.subr.bf16.mxu0 %v1000_v22  ;;  %1033 = vmatprep.subr.bf16.mxu1 %v1032_v23  ;;  %v451_v42 = vld [vmem:[#allocation5 + $0x120] sm:$0xff]  ;;  %v452_v43 = vld [vmem:[#allocation5 + $0x128] sm:$0xff]  ;;  %v469_v46 = vld [vmem:[#allocation5 + $0x1b0] sm:$0xff]  ;;  %v1010_v48 = vpack.c.bf16 %v420_v39, %v419_v38  ;;  %v1012_v52 = vpack.c.bf16 %v438_v45, %v437_v44 }
  0x31   :  { %1003 = vmatpush3.bf16.msra.mxu0 %v1002_v24  ;;  %1035 = vmatpush3.bf16.msra.mxu1 %v1034_v25  ;;  %v470_v47 = vld [vmem:[#allocation5 + $0x1b8] sm:$0xff]  ;;  %v1042_v49 = vpack.c.bf16 %v452_v43, %v451_v42  ;;  %v421_v50 = vld [vmem:[#allocation5 + $0x30] sm:$0xff]  ;;  %v439_v56 = vld [vmem:[#allocation5 + $0xc0] sm:$0xff] }
  0x32   :  { %1005 = vmatprep.subr.bf16.mxu0 %v1004_v28  ;;  %1037 = vmatprep.subr.bf16.mxu1 %v1036_v29  ;;  %v422_v51 = vld [vmem:[#allocation5 + $0x38] sm:$0xff]  ;;  %v1044_v53 = vpack.c.bf16 %v470_v47, %v469_v46  ;;  %v453_v54 = vld [vmem:[#allocation5 + $0x130] sm:$0xff]  ;;  %v440_v57 = vld [vmem:[#allocation5 + $0xc8] sm:$0xff] }
  0x33   :  { %v454_v55 = vld [vmem:[#allocation5 + $0x138] sm:$0xff]  ;;  %v471_v58 = vld [vmem:[#allocation5 + $0x1c0] sm:$0xff]  ;;  %v472_v59 = vld [vmem:[#allocation5 + $0x1c8] sm:$0xff]  ;;  %v1014_v60 = vpack.c.bf16 %v422_v51, %v421_v50  ;;  %v1016_v0 = vpack.c.bf16 %v440_v57, %v439_v56 }
  0x34   :  { %v1046_v61 = vpack.c.bf16 %v454_v55, %v453_v54  ;;  %v423_v62 = vld [vmem:[#allocation5 + $0x40] sm:$0xff]  ;;  %v424_v63 = vld [vmem:[#allocation5 + $0x48] sm:$0xff]  ;;  %v1048_v1 = vpack.c.bf16 %v472_v59, %v471_v58  ;;  %v441_v4 = vld [vmem:[#allocation5 + $0xd0] sm:$0xff] }
  0x35   :  { %1007 = vmatpush3.bf16.msra.mxu0 %v1006_v36  ;;  %1039 = vmatpush3.bf16.msra.mxu1 %v1038_v37  ;;  %v455_v2 = vld [vmem:[#allocation5 + $0x140] sm:$0xff]  ;;  %v456_v3 = vld [vmem:[#allocation5 + $0x148] sm:$0xff]  ;;  %v442_v5 = vld [vmem:[#allocation5 + $0xd8] sm:$0xff]  ;;  %v1018_v8 = vpack.c.bf16 %v424_v63, %v423_v62 }
  0x36   :  { %1009 = vmatprep.subr.bf16.mxu0 %v1008_v40  ;;  %1041 = vmatprep.subr.bf16.mxu1 %v1040_v41  ;;  %v473_v6 = vld [vmem:[#allocation5 + $0x1d0] sm:$0xff]  ;;  %v474_v7 = vld [vmem:[#allocation5 + $0x1d8] sm:$0xff]  ;;  %v1050_v9 = vpack.c.bf16 %v456_v3, %v455_v2  ;;  %v1020_v12 = vpack.c.bf16 %v442_v5, %v441_v4  ;;  %v443_v16 = vld [vmem:[#allocation5 + $0xe0] sm:$0xff] }
  0x37   :  { %v425_v10 = vld [vmem:[#allocation5 + $0x50] sm:$0xff]  ;;  %v426_v11 = vld [vmem:[#allocation5 + $0x58] sm:$0xff]  ;;  %v1052_v13 = vpack.c.bf16 %v474_v7, %v473_v6  ;;  %v444_v17 = vld [vmem:[#allocation5 + $0xe8] sm:$0xff] }
  0x38   :  { %v457_v14 = vld [vmem:[#allocation5 + $0x150] sm:$0xff]  ;;  %v458_v15 = vld [vmem:[#allocation5 + $0x158] sm:$0xff]  ;;  %v475_v18 = vld [vmem:[#allocation5 + $0x1e0] sm:$0xff]  ;;  %v1022_v20 = vpack.c.bf16 %v426_v11, %v425_v10  ;;  %v1024_v23 = vpack.c.bf16 %v444_v17, %v443_v16 }
  0x39   :  { %1011 = vmatpush3.bf16.msra.mxu0 %v1010_v48  ;;  %1043 = vmatpush3.bf16.msra.mxu1 %v1042_v49  ;;  %v476_v19 = vld [vmem:[#allocation5 + $0x1e8] sm:$0xff]  ;;  %v1054_v21 = vpack.c.bf16 %v458_v15, %v457_v14  ;;  %v427_v22 = vld [vmem:[#allocation5 + $0x60] sm:$0xff]  ;;  %v445_v30 = vld [vmem:[#allocation5 + $0xf0] sm:$0xff]  ;;  %v54_v48 = vlaneseq }
  0x3a   :  { %1013 = vmatprep.subr.bf16.mxu0 %v1012_v52  ;;  %1045 = vmatprep.subr.bf16.mxu1 %v1044_v53  ;;  %v1056_v24 = vpack.c.bf16 %v476_v19, %v475_v18  ;;  %v428_v25 = vld [vmem:[#allocation5 + $0x68] sm:$0xff]  ;;  %v459_v26 = vld [vmem:[#allocation5 + $0x160] sm:$0xff]  ;;  %v446_v31 = vld [vmem:[#allocation5 + $0xf8] sm:$0xff] }
  0x3b   :  { %v460_v27 = vld [vmem:[#allocation5 + $0x168] sm:$0xff]  ;;  %v1026_v28 = vpack.c.bf16 %v428_v25, %v427_v22  ;;  %v477_v32 = vld [vmem:[#allocation5 + $0x1f0] sm:$0xff]  ;;  %v1028_v33 = vpack.c.bf16 %v446_v31, %v445_v30  ;;  %v478_v34 = vld [vmem:[#allocation5 + $0x1f8] sm:$0xff]  ;;  %v1292_v49 = vshrl.u32 %v54_v48, 7 }
  0x3c   :  { %v1058_v29 = vpack.c.bf16 %v460_v27, %v459_v26  ;;  %v429_v35 = vld [vmem:[#allocation5 + $0x70] sm:$0xff]  ;;  %v430_v36 = vld [vmem:[#allocation5 + $0x78] sm:$0xff]  ;;  %v1060_v37 = vpack.c.bf16 %v478_v34, %v477_v32  ;;  %v495_v42 = vld [vmem:[#allocation5 + $0x280] sm:$0xff] }
  0x3d   :  { %1015 = vmatpush3.bf16.msra.mxu0 %v1014_v60  ;;  %1047 = vmatpush3.bf16.msra.mxu1 %v1046_v61  ;;  %v1030_v38 = vpack.c.bf16 %v430_v36, %v429_v35  ;;  %v461_v39 = vld [vmem:[#allocation5 + $0x170] sm:$0xff]  ;;  %v462_v40 = vld [vmem:[#allocation5 + $0x178] sm:$0xff]  ;;  %v496_v43 = vld [vmem:[#allocation5 + $0x288] sm:$0xff]  ;;  %v56_v50 = vsub.s32 0, %v1292_v49  ;;  %v64_v51 = vsub.s32 2, %v1292_v49  ;;  %v60_v53 = vsub.s32 1, %v1292_v49 }
  0x3e   :  { %1017 = vmatprep.subr.bf16.mxu0 %v1016_v0  ;;  %1049 = vmatprep.subr.bf16.mxu1 %v1048_v1  ;;  %v1062_v41 = vpack.c.bf16 %v462_v40, %v461_v39  ;;  %v527_v44 = vld [vmem:[#allocation5 + $0x380] sm:$0xff]  ;;  %v1064_v45 = vpack.c.bf16 %v496_v43, %v495_v42  ;;  %v528_v46 = vld [vmem:[#allocation5 + $0x388] sm:$0xff]  ;;  %v1299_v52 = vld [vmem:[%s1338_s2] sm:$0xff]  ;;  %v68_v54 = vsub.s32 3, %v1292_v49  ;;  %v76_v59 = vsub.s32 5, %v1292_v49 }
  0x3f   :  { %v1096_v47 = vpack.c.bf16 %v528_v46, %v527_v44  ;;  %v57_v55 = vrot.slane %v1299_v52, %v56_v50  ;;  %v65_v56 = vrot.slane %v1299_v52, %v64_v51  ;;  %v61_v57 = vrot.slane %v1299_v52, %v60_v53  ;;  %v479_v63 = vld [vmem:[#allocation5 + $0x200] sm:$0xff]  ;;  %v480_v0 = vld [vmem:[#allocation5 + $0x208] sm:$0xff]  ;;  %v497_v7 = vld [vmem:[#allocation5 + $0x290] sm:$0xff] }
  0x40   :  { %v69_v58 = vrot.slane %v1299_v52, %v68_v54  ;;  %v84_v60 = vsub.s32 7, %v1292_v49  ;;  %v511_v5 = vld [vmem:[#allocation5 + $0x300] sm:$0xff]  ;;  %v512_v6 = vld [vmem:[#allocation5 + $0x308] sm:$0xff]  ;;  %v498_v10 = vld [vmem:[#allocation5 + $0x298] sm:$0xff]  ;;  %v1066_v18 = vpack.c.bf16 %v480_v0, %v479_v63 }
  0x41   :  { %1019 = vmatpush3.bf16.msra.mxu0 %v1018_v8  ;;  %1051 = vmatpush3.bf16.msra.mxu1 %v1050_v9  ;;  %v529_v11 = vld [vmem:[#allocation5 + $0x390] sm:$0xff]  ;;  %v1098_v19 = vpack.c.bf16 %v512_v6, %v511_v5  ;;  %v1068_v25 = vpack.c.bf16 %v498_v10, %v497_v7  ;;  %v500_v32 = vld [vmem:[#allocation5 + $0x2a8] sm:$0xff]  ;;  %v483_v39 = vld [vmem:[#allocation5 + $0x220] sm:$0xff] }
  0x42   :  { %1021 = vmatprep.subr.bf16.mxu0 %v1020_v12  ;;  %1053 = vmatprep.subr.bf16.mxu1 %v1052_v13  ;;  %v530_v12 = vld [vmem:[#allocation5 + $0x398] sm:$0xff]  ;;  %v77_v13 = vrot.slane %v1299_v52, %v76_v59  ;;  %v85_v14 = vrot.slane %v1299_v52, %v84_v60  ;;  %v513_v27 = vld [vmem:[#allocation5 + $0x310] sm:$0xff]  ;;  %v532_v34 = vld [vmem:[#allocation5 + $0x3a8] sm:$0xff] }
  0x43   :  { %v1100_v26 = vpack.c.bf16 %v530_v12, %v529_v11  ;;  %v484_v40 = vld [vmem:[#allocation5 + $0x228] sm:$0xff]  ;;  %v502_v48 = vld [vmem:[#allocation5 + $0x2b8] sm:$0xff]  ;;  %v533_v50 = vld [vmem:[#allocation5 + $0x3b0] sm:$0xff] }
  0x44   :  { %v516_v46 = vld [vmem:[#allocation5 + $0x328] sm:$0xff]  ;;  %v534_v51 = vld [vmem:[#allocation5 + $0x3b8] sm:$0xff]  ;;  %v1074_v53 = vpack.c.bf16 %v484_v40, %v483_v39  ;;  %v517_v59 = vld [vmem:[#allocation5 + $0x330] sm:$0xff] }
  0x45   :  { %1023 = vmatpush3.bf16.msra.mxu0 %v1022_v20  ;;  %1055 = vmatpush3.bf16.msra.mxu1 %v1054_v21  ;;  %v481_v20 = vld [vmem:[#allocation5 + $0x210] sm:$0xff]  ;;  %v482_v21 = vld [vmem:[#allocation5 + $0x218] sm:$0xff]  ;;  %v535_v63 = vld [vmem:[#allocation5 + $0x3c0] sm:$0xff] }
  0x46   :  { %1025 = vmatprep.subr.bf16.mxu0 %v1024_v23  ;;  %1057 = vmatprep.subr.bf16.mxu1 %v1056_v24  ;;  %v518_v60 = vld [vmem:[#allocation5 + $0x338] sm:$0xff]  ;;  %v536_v0 = vld [vmem:[#allocation5 + $0x3c8] sm:$0xff]  ;;  %v519_v7 = vld [vmem:[#allocation5 + $0x340] sm:$0xff] }
  0x47   :  { %v1112_v6 = vpack.c.bf16 %v536_v0, %v535_v63  ;;  %v506_v10 = vld [vmem:[#allocation5 + $0x2d8] sm:$0xff]  ;;  %v537_v11 = vld [vmem:[#allocation5 + $0x3d0] sm:$0xff] }
  0x48   :  { %v538_v12 = vld [vmem:[#allocation5 + $0x3d8] sm:$0xff]  ;;  %v541_v39 = vld [vmem:[#allocation5 + $0x3f0] sm:$0xff] }
  0x49   :  { %1027 = vmatpush3.bf16.msra.mxu0 %v1026_v28  ;;  %1059 = vmatpush3.bf16.msra.mxu1 %v1058_v29  ;;  %v514_v28 = vld [vmem:[#allocation5 + $0x318] sm:$0xff]  ;;  %v499_v29 = vld [vmem:[#allocation5 + $0x2a0] sm:$0xff] }
  0x4a   :  { %1029 = vmatprep.subr.bf16.mxu0 %v1028_v33  ;;  %1061 = vmatprep.subr.bf16.mxu1 %v1060_v37  ;;  %v531_v33 = vld [vmem:[#allocation5 + $0x3a0] sm:$0xff]  ;;  %v1070_v37 = vpack.c.bf16 %v482_v21, %v481_v20  ;;  %v1072_v43 = vpack.c.bf16 %v500_v32, %v499_v29  ;;  %v522_v20 = vld [vmem:[#allocation5 + $0x358] sm:$0xff]  ;;  %v72_v32 = vsub.s32 4, %v1292_v49 }
  0x4b   :  { %v1104_v44 = vpack.c.bf16 %v532_v34, %v531_v33  ;;  %v507_v21 = vld [vmem:[#allocation5 + $0x2e0] sm:$0xff]  ;;  %v542_v40 = vld [vmem:[#allocation5 + $0x3f8] sm:$0xff] }
  0x4d   :  { %1031 = vmatpush3.bf16.msra.mxu0 %v1030_v38  ;;  %1063 = vmatpush3.bf16.msra.mxu1 %v1062_v41  ;;  %v1102_v38 = vpack.c.bf16 %v514_v28, %v513_v27  ;;  %v80_v27 = vsub.s32 6, %v1292_v49 }
  0x4e   :  { %1065 = vmatprep.subr.bf16.mxu0 %v1064_v45  ;;  %1097 = vmatprep.subr.bf16.mxu1 %v1096_v47  ;;  %v515_v45 = vld [vmem:[#allocation5 + $0x320] sm:$0xff]  ;;  %v501_v47 = vld [vmem:[#allocation5 + $0x2b0] sm:$0xff] }
  0x4f   :  { %v1106_v54 = vpack.c.bf16 %v516_v46, %v515_v45  ;;  %v73_v45 = vrot.slane %v1299_v52, %v72_v32  ;;  %v1124_v46 = vpack.c.bf16 %v542_v40, %v541_v39 }
  0xfe   :  { %v189_v61 = vpop.f32.mrb[0].mxu0  ;;  %v260_v62 = vpop.f32.mrb[0].mxu1 }
  0xff   :  { %v190_v1 = vadd.f32 %v189_v61, %v57_v55  ;;  %v261_v2 = vadd.f32 %v260_v62, %v65_v56  ;;  %v191_v3 = vpop.f32.mrb[1].mxu0  ;;  %v262_v4 = vpop.f32.mrb[1].mxu1  ;;  %v485_v55 = vld [vmem:[#allocation5 + $0x230] sm:$0xff]  ;;  %v486_v56 = vld [vmem:[#allocation5 + $0x238] sm:$0xff]  ;;  %v503_v61 = vld [vmem:[#allocation5 + $0x2c0] sm:$0xff] }
 0x100   :  { %v192_v8 = vadd.f32 %v191_v3, %v61_v57  ;;  %v263_v9 = vadd.f32 %v262_v4, %v69_v58  ;;  %v1076_v57 = vpack.c.bf16 %v502_v48, %v501_v47  ;;  %v1108_v58 = vpack.c.bf16 %v534_v51, %v533_v50  ;;  %v504_v62 = vld [vmem:[#allocation5 + $0x2c8] sm:$0xff]  ;;  %v487_v3 = vld [vmem:[#allocation5 + $0x240] sm:$0xff]  ;;  %v494_v47 = vld [vmem:[#allocation5 + $0x278] sm:$0xff] }
 0x101   :  { %v409_v15 = vmax.f32 %v261_v2, 0.0  ;;  %v407_v24 = vmax.f32 %v190_v1, 0.0  ;;  %v1078_v1 = vpack.c.bf16 %v486_v56, %v485_v55  ;;  %v1110_v2 = vpack.c.bf16 %v518_v60, %v517_v59  ;;  %v488_v4 = vld [vmem:[#allocation5 + $0x248] sm:$0xff]  ;;  %v525_v48 = vld [vmem:[#allocation5 + $0x370] sm:$0xff]  ;;  %v526_v50 = vld [vmem:[#allocation5 + $0x378] sm:$0xff] }
 0x102   :  { %v408_v16 = vmax.f32 %v192_v8, 0.0  ;;  %v410_v17 = vmax.f32 %v263_v9, 0.0  ;;  %v1311_v22 = vpop.f32.mrb[2].mxu0  ;;  %v1313_v23 = vpop.f32.mrb[2].mxu1  ;;  %v1080_v5 = vpack.c.bf16 %v504_v62, %v503_v61  ;;  %v520_v8 = vld [vmem:[#allocation5 + $0x348] sm:$0xff]  ;;  %v505_v9 = vld [vmem:[#allocation5 + $0x2d0] sm:$0xff] }
 0x103   :  { %v333_v30 = vpop.f32.mrb[3].mxu0  ;;  %v404_v31 = vpop.f32.mrb[3].mxu1  ;;  %v332_v55 = vadd.f32 %v1311_v22, %v73_v45 }
 0x104   :  { %614 = vmatprep.mubr.f32.mxu0 %v408_v16  ;;  %684 = vmatprep.mubr.f32.mxu1 %v410_v17  ;;  %v334_v35 = vadd.f32 %v333_v30, %v77_v13  ;;  %v405_v36 = vadd.f32 %v404_v31, %v85_v14  ;;  %v1082_v13 = vpack.c.bf16 %v488_v4, %v487_v3  ;;  %v490_v16 = vld [vmem:[#allocation5 + $0x258] sm:$0xff]  ;;  %v491_v30 = vld [vmem:[#allocation5 + $0x260] sm:$0xff]  ;;  %v492_v31 = vld [vmem:[#allocation5 + $0x268] sm:$0xff] }
 0x105   :  { %615 = vmatmul.mubr.f32.vlgmr.msra.gmra.mrb[4].mxu0 %v407_v24  ;;  %685 = vmatmul.mubr.f32.vlgmr.msra.gmra.mrb[4].mxu1 %v409_v15  ;;  %v1114_v14 = vpack.c.bf16 %v520_v8, %v519_v7  ;;  %v489_v15 = vld [vmem:[#allocation5 + $0x250] sm:$0xff]  ;;  %v1084_v17 = vpack.c.bf16 %v506_v10, %v505_v9  ;;  %v508_v24 = vld [vmem:[#allocation5 + $0x2e8] sm:$0xff] }
 0x106   :  { %1067 = vmatpush3.bf16.msra.mxu0 %v1066_v18  ;;  %1099 = vmatpush3.bf16.msra.mxu1 %v1098_v19  ;;  %v412_v41 = vmax.f32 %v334_v35, 0.0  ;;  %v414_v42 = vmax.f32 %v405_v36, 0.0  ;;  %v1116_v18 = vpack.c.bf16 %v538_v12, %v537_v11  ;;  %v521_v19 = vld [vmem:[#allocation5 + $0x350] sm:$0xff]  ;;  %v1086_v28 = vpack.c.bf16 %v490_v16, %v489_v15  ;;  %v523_v35 = vld [vmem:[#allocation5 + $0x360] sm:$0xff]  ;;  %v524_v36 = vld [vmem:[#allocation5 + $0x368] sm:$0xff] }
 0x107   :  { %1069 = vmatprep.subr.bf16.mxu0 %v1068_v25  ;;  %1101 = vmatprep.subr.bf16.mxu1 %v1100_v26  ;;  %v539_v25 = vld [vmem:[#allocation5 + $0x3e0] sm:$0xff]  ;;  %v540_v26 = vld [vmem:[#allocation5 + $0x3e8] sm:$0xff]  ;;  %v1118_v29 = vpack.c.bf16 %v522_v20, %v521_v19  ;;  %v1088_v33 = vpack.c.bf16 %v508_v24, %v507_v21 }
 0x108   :  { %754 = vmatprep.mubr.f32.mxu0 %v412_v41  ;;  %824 = vmatprep.mubr.f32.mxu1 %v414_v42  ;;  %v1120_v34 = vpack.c.bf16 %v540_v26, %v539_v25  ;;  %v81_v41 = vrot.slane %v1299_v52, %v80_v27  ;;  %v1090_v42 = vpack.c.bf16 %v492_v31, %v491_v30  ;;  %v411_v52 = vmax.f32 %v332_v55, 0.0 }
 0x10a   :  { %1071 = vmatpush3.bf16.msra.mxu0 %v1070_v37  ;;  %1103 = vmatpush3.bf16.msra.mxu1 %v1102_v38  ;;  %v509_v37 = vld [vmem:[#allocation5 + $0x2f0] sm:$0xff]  ;;  %v510_v38 = vld [vmem:[#allocation5 + $0x2f8] sm:$0xff]  ;;  %v403_v51 = vadd.f32 %v1313_v23, %v81_v41 }
 0x10b   :  { %1073 = vmatprep.subr.bf16.mxu0 %v1072_v43  ;;  %1105 = vmatprep.subr.bf16.mxu1 %v1104_v44  ;;  %v1122_v43 = vpack.c.bf16 %v524_v36, %v523_v35  ;;  %v493_v44 = vld [vmem:[#allocation5 + $0x270] sm:$0xff]  ;;  %v1092_v49 = vpack.c.bf16 %v510_v38, %v509_v37  ;;  %v859_v23 = vld [vmem:[%s1340_s4] ss:$0 sm:$0xff] }
 0x10c   :  { %v413_v56 = vmax.f32 %v403_v51, 0.0 }
 0x10e   :  { %1075 = vmatpush3.bf16.msra.mxu0 %v1074_v53  ;;  %1107 = vmatpush3.bf16.msra.mxu1 %v1106_v54  ;;  %v1094_v53 = vpack.c.bf16 %v494_v47, %v493_v44  ;;  %v1126_v54 = vpack.c.bf16 %v526_v50, %v525_v48 }
 0x10f   :  { %1077 = vmatprep.subr.bf16.mxu0 %v1076_v57  ;;  %1109 = vmatprep.subr.bf16.mxu1 %v1108_v58 }
 0x112   :  { %1079 = vmatpush3.bf16.msra.mxu0 %v1078_v1  ;;  %1111 = vmatpush3.bf16.msra.mxu1 %v1110_v2 }
 0x113   :  { %1081 = vmatprep.subr.bf16.mxu0 %v1080_v5  ;;  %1113 = vmatprep.subr.bf16.mxu1 %v1112_v6 }
 0x116   :  { %1083 = vmatpush3.bf16.msra.mxu0 %v1082_v13  ;;  %1115 = vmatpush3.bf16.msra.mxu1 %v1114_v14 }
 0x117   :  { %1085 = vmatprep.subr.bf16.mxu0 %v1084_v17  ;;  %1117 = vmatprep.subr.bf16.mxu1 %v1116_v18 }
 0x11a   :  { %1087 = vmatpush3.bf16.msra.mxu0 %v1086_v28  ;;  %1119 = vmatpush3.bf16.msra.mxu1 %v1118_v29 }
 0x11b   :  { %1089 = vmatprep.subr.bf16.mxu0 %v1088_v33  ;;  %1121 = vmatprep.subr.bf16.mxu1 %v1120_v34 }
 0x11e   :  { %1091 = vmatpush3.bf16.msra.mxu0 %v1090_v42  ;;  %1123 = vmatpush3.bf16.msra.mxu1 %v1122_v43 }
 0x11f   :  { %1093 = vmatprep.subr.bf16.mxu0 %v1092_v49  ;;  %1125 = vmatprep.subr.bf16.mxu1 %v1124_v46 }
 0x122   :  { %1095 = vmatpush3.bf16.msra.mxu0 %v1094_v53  ;;  %1127 = vmatpush3.bf16.msra.mxu1 %v1126_v54 }
 0x125   :  { %755 = vmatmul.mubr.f32.vlgmr.msra.gmra.mrb[6].mxu0 %v411_v52  ;;  %825 = vmatmul.mubr.f32.vlgmr.msra.gmra.mrb[6].mxu1 %v413_v56 }
 0x1d8   :  { %v892_v57 = vpop.f32.mrb[4].mxu0  ;;  %v927_v58 = vpop.f32.mrb[4].mxu1 }
 0x1d9   :  { %v893_v59 = vpop.f32.mrb[5].mxu0  ;;  %v928_v60 = vpop.f32.mrb[5].mxu1 }
 0x1da   :  { %v894_v61 = vadd.f32 %v893_v59, %v892_v57  ;;  %v929_v62 = vadd.f32 %v928_v60, %v927_v58 }
 0x1dc   :  { %v617_v63 = vadd.f32 %v894_v61, %v859_v23 }
 0x1de   :  { %v687_v22 = vadd.f32 %v929_v62, %v617_v63 }
 0x1f8   :  { %v962_v0 = vpop.f32.mrb[6].mxu0  ;;  %v997_v1 = vpop.f32.mrb[6].mxu1 }
 0x1f9   :  { %v963_v2 = vpop.f32.mrb[7].mxu0  ;;  %v998_v3 = vpop.f32.mrb[7].mxu1 }
 0x1fa   :  { %v964_v4 = vadd.f32 %v963_v2, %v962_v0  ;;  %v999_v5 = vadd.f32 %v998_v3, %v997_v1 }
 0x1fc   :  { %v757_v6 = vadd.f32 %v964_v4, %v687_v22 }
 0x1fe   :  { %v827_v7 = vadd.f32 %v999_v5, %v757_v6 }
 0x200   :  { %830 = vst [vmem:[#allocation7] sm:$0xff] %v827_v7 }
 0x201   :  { %1193 = shalt.err (!%p1190_p6)
}
 0x202   :  { %s1194_s25 = scalar_lea.hbm %s1341_s5, 128 }
 0x203   :  { %p1195_p7 = scmp.ne.s32.totalorder %s1341_s5, %s1194_s25  ;;  %p1198_p8 = scmp.lt.u32.totalorder %s1194_s25, %s1341_s5 }
 0x205   :  { %p1200_p9 = pnand %p1198_p8, %p1195_p7 }
 0x207   :  { %1203 = shalt.err (!%p1200_p9)
}
 0x208   :  { %840 = dma.vmem_to_hbm [thread:$0]  %s838_s22, 128, %s1341_s5, [#allocation4]  }
 0x209   :  { %1208 = dma.done.wait [#allocation4], 128  }
 0x20a   :  { %1209 = vsyncadd [#allocation4], 4294967168 }
 0x20b   :  { %844 = vsyncpa [#allocation3], 1 }
 0x20c   :  { %845 = vsyncpa [#allocation6], 1 }
 0x20d   :  { %846 = vsyncpa [#allocation4], 1 }

</bundles_post_ra>
